<compile_context>
chip_gen: v6e
topology: v6e:2x2x1
jax: 0.10.0
libtpu: 0.0.40
codegen_flags: <defaults>
</compile_context>

<pallas_src>
import functools

import jax
import jax.numpy as jnp
from jax.experimental import pallas as pl
from jax.experimental.pallas import tpu as pltpu


def _linear_lora_kernel(x_ref, w_ref, bias_ref, a_ref, b_ref, o_ref,
                        acc_ref, xa_ref, *, alpha):
    j = pl.program_id(1)
    k = pl.program_id(2)
    nk = pl.num_programs(2)

    @pl.when(k == 0)
    def _():
        acc_ref[...] = jnp.zeros_like(acc_ref)

    x = x_ref[...]
    # Base linear path (dominant matmul) — MXU, f32 accumulation.
    acc_ref[...] += jnp.dot(x, w_ref[...], preferred_element_type=jnp.float32)

    # LoRA down-projection x@A: rank pads to the MXU width, so recomputing it
    # for every j-tile wastes ~(MXU_width / tile_n) of the base matmul per
    # step.  Compute it only on the first N tile; the xa scratch persists and
    # is reused for all later j of the same batch tile (N axis must therefore
    # be "arbitrary", i.e. not megacore-sharded — see compiler_params).
    @pl.when(j == 0)
    def _():
        @pl.when(k == 0)
        def _():
            xa_ref[...] = jnp.zeros_like(xa_ref)
        xa_ref[...] += jnp.dot(x, a_ref[...], preferred_element_type=jnp.float32)

    @pl.when(k == nk - 1)
    def _():
        # alpha applied to the tiny (tile_m, rank) intermediate; keep the
        # epilogue matmul in the streamed dtype (bf16 x bf16 -> f32 is a
        # single MXU pass) instead of upcasting B to f32.
        lora = jnp.dot((alpha * xa_ref[...]).astype(b_ref.dtype),
                       b_ref[...], preferred_element_type=jnp.float32)
        out = acc_ref[...] + lora + bias_ref[...].astype(jnp.float32)
        o_ref[...] = out.astype(o_ref.dtype)


def _round_up(x, m):
    return ((x + m - 1) // m) * m


def _cdiv(a, b):
    return (a + b - 1) // b


def _pad2(a, rows, cols):
    pr, pc = rows - a.shape[0], cols - a.shape[1]
    if pr or pc:
        a = jnp.pad(a, ((0, pr), (0, pc)))
    return a


def _pick_tile(dim, target, multiple):
    """Pick a `multiple`-aligned tile <= max(target, multiple).  Prefers:
    (1) the whole (rounded-up) dim if it fits the target,
    (2) an exact divisor of dim (no padding),
    (3) otherwise the aligned tile <= target that minimizes padding."""
    dim_up = _round_up(dim, multiple)
    if dim_up <= target:
        return dim_up
    top = max(multiple, (target // multiple) * multiple)
    c = top
    while c >= multiple:
        if dim % c == 0:
            return c
        c -= multiple
    best, best_pad = top, _round_up(dim, top)
    c = top
    while c >= multiple:
        p = _round_up(dim, c)
        if p < best_pad:
            best, best_pad = c, p
        c -= multiple
    return best


def _vmem_capacity_bytes():
    try:
        cap = int(pltpu.get_tpu_info().vmem_capacity_bytes)
        if cap > 0:
            return cap
    except Exception:
        pass
    return 64 << 20   # conservative fallback: v7x per-TensorCore VMEM


def linear_lora_forward(x, W, bias, A, B, alpha, *,
                        tile_m=None, tile_n=None, tile_k=None,
                        compute_dtype=jnp.bfloat16):
    """out = x @ W + bias + alpha * (x @ A @ B), fused in one Pallas kernel.

    W is expected in (in_dim, out_dim) layout (i.e. torch_linear.weight.T).
    Streamed operands are cast to `compute_dtype` (default bf16) for MXU/HBM
    efficiency; accumulation is always f32.  Pass compute_dtype=None to keep
    the input dtype.
    """
    batch, in_dim = x.shape
    rank, out_dim = B.shape
    assert A.shape == (in_dim, rank)
    assert W.shape == (in_dim, out_dim)
    out_dtype = x.dtype
    if bias is None:
        bias = jnp.zeros((out_dim,), out_dtype)
    assert bias.shape == (out_dim,)

    if compute_dtype is not None:
        x = x.astype(compute_dtype)
        W = W.astype(compute_dtype)
        A = A.astype(compute_dtype)
        B = B.astype(compute_dtype)

    itemsize = jnp.dtype(x.dtype).itemsize
    out_itemsize = jnp.dtype(out_dtype).itemsize
    bias_itemsize = jnp.dtype(bias.dtype).itemsize
    # Sub-32-bit dtypes pack along sublanes: bf16 wants 16-row, int8/fp8 32-row.
    m_align = {4: 8, 2: 16, 1: 32}.get(itemsize, 8)

    cap = _vmem_capacity_bytes()
    vmem_budget = int(cap * 0.8)          # ~51 MiB on v7x, ~102 MiB on v5e/v6e
    big_vmem = cap >= (100 << 20)

    auto_m = tile_m is None
    if tile_m is None:
        tile_m = _pick_tile(batch, 1024 if (big_vmem and itemsize <= 2) else 512,
                            m_align)
    if tile_n is None:
        tile_n = _pick_tile(out_dim, 2048 if (big_vmem and itemsize <= 2) else 1024,
                            128)
    if tile_k is None:
        tile_k = _pick_tile(in_dim, 2048, 128)

    # v7x megacore: batch is the only parallel axis (N is "arbitrary" because
    # of the xa-reuse guard); make sure it has >= 2 blocks when possible.
    if auto_m and _cdiv(batch, tile_m) < 2 and batch >= 2 * m_align:
        tile_m = _round_up(_cdiv(batch, 2), m_align)

    def _est(tm, tn, tk):
        return (2 * tm * tk * itemsize          # x   (double buffered)
                + 2 * tk * tn * itemsize        # W
                + 2 * tk * rank * itemsize      # A
                + 2 * rank * tn * itemsize      # B
                + 2 * tn * bias_itemsize        # bias
                + 2 * tm * tn * out_itemsize    # out
                + tm * tn * 4                   # acc scratch (f32)
                + tm * rank * 4)                # xa scratch (f32)

    headroom = 4 << 20
    while _est(tile_m, tile_n, tile_k) + headroom > vmem_budget:
        if tile_k > 128:
            tile_k = max(128, (tile_k // 2 // 128) * 128)
        elif tile_n > 128:
            tile_n = max(128, (tile_n // 2 // 128) * 128)
        elif tile_m > m_align:
            tile_m = max(m_align, (tile_m // 2 // m_align) * m_align)
        else:
            break

    # Zero-pad awkward shapes up to tile multiples (exact for the matmuls;
    # a no-op for the common aligned case), slice the output back afterwards.
    pad_m = _round_up(batch, tile_m)
    pad_k = _round_up(in_dim, tile_k)
    pad_n = _round_up(out_dim, tile_n)

    x_p = _pad2(x, pad_m, pad_k)
    W_p = _pad2(W, pad_k, pad_n)
    A_p = _pad2(A, pad_k, rank)
    B_p = _pad2(B, rank, pad_n)
    bias_p = _pad2(bias.reshape(1, out_dim), 1, pad_n)

    grid = (pad_m // tile_m, pad_n // tile_n, pad_k // tile_k)

    vmem_limit = int(min(max(_est(tile_m, tile_n, tile_k) + headroom, 32 << 20),
                         vmem_budget))

    flops = (2 * pad_m * pad_k * pad_n
             + 2 * pad_m * pad_k * rank
             + 2 * pad_m * rank * pad_n)
    bytes_accessed = (x_p.size * itemsize + W_p.size * itemsize
                      + A_p.size * itemsize + B_p.size * itemsize
                      + bias_p.size * bias_itemsize
                      + pad_m * pad_n * out_itemsize)

    out = pl.pallas_call(
        functools.partial(_linear_lora_kernel, alpha=float(alpha)),
        out_shape=jax.ShapeDtypeStruct((pad_m, pad_n), out_dtype),
        grid_spec=pltpu.PrefetchScalarGridSpec(
            num_scalar_prefetch=0,
            grid=grid,
            in_specs=[
                pl.BlockSpec((tile_m, tile_k), lambda i, j, k: (i, k)),   # x
                pl.BlockSpec((tile_k, tile_n), lambda i, j, k: (k, j)),   # W
                pl.BlockSpec((1, tile_n), lambda i, j, k: (0, j)),        # bias
                pl.BlockSpec((tile_k, rank), lambda i, j, k: (k, 0)),     # A
                pl.BlockSpec((rank, tile_n), lambda i, j, k: (0, j)),     # B
            ],
            out_specs=pl.BlockSpec((tile_m, tile_n), lambda i, j, k: (i, j)),
            scratch_shapes=[
                pltpu.VMEM((tile_m, tile_n), jnp.float32),  # base-linear acc
                pltpu.VMEM((tile_m, rank), jnp.float32),    # x @ A acc
            ],
        ),
        compiler_params=pltpu.CompilerParams(
            # N ("j") must stay "arbitrary": the xa scratch is written only on
            # j==0 and reused by later j tiles, so j may not be core-sharded.
            dimension_semantics=("parallel", "arbitrary", "arbitrary"),
            vmem_limit_bytes=vmem_limit,
        ),
        cost_estimate=pl.CostEstimate(
            flops=int(flops), transcendentals=0,
            bytes_accessed=int(bytes_accessed)),
    )(x_p, W_p, bias_p, A_p, B_p)

    if pad_m != batch or pad_n != out_dim:
        out = out[:batch, :out_dim]
    return out


def init_lora_params(key, in_dim, out_dim, rank):
    """Deterministic re-implementation of LoRALayer.__init__:
    A ~ Uniform[0, 1) * (1 / sqrt(rank)),  B = zeros."""
    std_dev = 1.0 / jnp.sqrt(jnp.asarray(rank, jnp.float32))
    A = jax.random.uniform(key, (in_dim, rank), dtype=jnp.float32) * std_dev
    B = jnp.zeros((rank, out_dim), dtype=jnp.float32)
    return A, B


def _ref_forward(x, W, bias, A, B, alpha, compute_dtype=jnp.bfloat16):
    """Pure-JAX reference mirroring the kernel's bf16 streaming / f32 accum."""
    f32 = jnp.float32
    if compute_dtype is not None:
        xf = x.astype(compute_dtype).astype(f32)
        Wf = W.astype(compute_dtype).astype(f32)
        Af = A.astype(compute_dtype).astype(f32)
        Bf = B.astype(compute_dtype).astype(f32)
        xa = xf @ Af
        lora = ((alpha * xa).astype(compute_dtype).astype(f32)) @ Bf
        return xf @ Wf + bias.astype(f32) + lora
    return x @ W + bias + alpha * (x @ A @ B)


if __name__ == "__main__":
    key = jax.random.PRNGKey(0)
    k_x, k_w, k_bias, k_a, k_b = jax.random.split(key, 5)

    # Test 1: shapes consistent with LinearWithLoRA(Linear(32, 64), rank=4, alpha=2)
    batch, in_dim, out_dim, rank, alpha = 8, 32, 64, 4, 2.0
    x = jax.random.normal(k_x, (batch, in_dim), dtype=jnp.float32)
    W = jax.random.normal(k_w, (in_dim, out_dim), jnp.float32) / jnp.sqrt(float(in_dim))
    bias = jax.random.normal(k_bias, (out_dim,), jnp.float32)
    A, B = init_lora_params(k_a, in_dim, out_dim, rank)  # B == 0 at init

    out = jax.block_until_ready(linear_lora_forward(x, W, bias, A, B, alpha))
    ref = _ref_forward(x, W, bias, A, B, alpha)
    assert out.shape == (batch, out_dim)
    assert jnp.allclose(out, ref, atol=2e-3, rtol=2e-3), "mismatch vs reference"

    # Test 2: non-zero B and an explicit multi-step (2, 2, 2) grid to exercise
    # the K accumulation and the j==0-guarded xa reuse across N tiles.
    batch2, in2, out2 = 32, 256, 256
    x2 = jax.random.normal(k_x, (batch2, in2), jnp.float32)
    W2 = jax.random.normal(k_w, (in2, out2), jnp.float32) / jnp.sqrt(float(in2))
    b2 = jax.random.normal(k_bias, (out2,), jnp.float32)
    A2, _ = init_lora_params(k_a, in2, out2, rank)
    B2 = jax.random.normal(k_b, (rank, out2), jnp.float32) / jnp.sqrt(float(rank))
    out2_ = jax.block_until_ready(
        linear_lora_forward(x2, W2, b2, A2, B2, alpha,
                            tile_m=16, tile_n=128, tile_k=128))
    ref2 = _ref_forward(x2, W2, b2, A2, B2, alpha)
    assert out2_.shape == (batch2, out2)
    assert jnp.allclose(out2_, ref2, atol=0.1, rtol=0.05), "mismatch (tiled path)"

    # Test 3: f32 streaming path (compute_dtype=None), exact reference.
    out3 = jax.block_until_ready(
        linear_lora_forward(x2, W2, b2, A2, B2, alpha, compute_dtype=None,
                            tile_m=8, tile_n=128, tile_k=128))
    ref3 = _ref_forward(x2, W2, b2, A2, B2, alpha, compute_dtype=None)
    assert jnp.allclose(out3, ref3, atol=1e-3, rtol=1e-3), "mismatch (f32 path)"

    print("KERNEL_OK")
</pallas_src>

<mosaic_0001>
module attributes {stable_mosaic.version = 11 : i64} {
  func.func @_linear_lora_kernel(%arg0: i32, %arg1: i32, %arg2: i32, %arg3: memref<16x128xbf16, #tpu.memory_space<vmem>>, %arg4: memref<128x128xbf16, #tpu.memory_space<vmem>>, %arg5: memref<1x128xf32, #tpu.memory_space<vmem>>, %arg6: memref<128x4xbf16, #tpu.memory_space<vmem>>, %arg7: memref<4x128xbf16, #tpu.memory_space<vmem>>, %arg8: memref<16x128xf32, #tpu.memory_space<vmem>>, %arg9: memref<16x128xf32, #tpu.memory_space<vmem>>, %arg10: memref<16x4xf32, #tpu.memory_space<vmem>>) attributes {dimension_semantics = [#tpu.dimension_semantics<parallel>, #tpu.dimension_semantics<arbitrary>, #tpu.dimension_semantics<arbitrary>], iteration_bounds = array<i64: 1, 1, 1>, scalar_prefetch = 0 : i64, scratch_operands = 2 : i64, tpu.core_type = #tpu.core_type<tc>, window_params = [{transform_indices = @transform_0, window_bounds = array<i64: 16, 128>}, {transform_indices = @transform_1, window_bounds = array<i64: 128, 128>}, {transform_indices = @transform_2, window_bounds = array<i64: 1, 128>}, {transform_indices = @transform_3, window_bounds = array<i64: 128, 4>}, {transform_indices = @transform_4, window_bounds = array<i64: 4, 128>}, {transform_indices = @transform_5, window_bounds = array<i64: 16, 128>}]} {
    %c0_i32 = arith.constant 0 : i32
    %0 = arith.cmpi eq, %arg2, %c0_i32 : i32
    %1 = arith.extui %0 : i1 to i32
    %c0_i32_0 = arith.constant 0 : i32
    %2 = arith.cmpi ne, %1, %c0_i32_0 : i32
    scf.if %2 {
      %cst_12 = arith.constant 0.000000e+00 : f32
      %15 = vector.broadcast %cst_12 : f32 to vector<16x128xf32>
      %c0_13 = arith.constant 0 : index
      %c0_14 = arith.constant 0 : index
      %16 = vector.load %arg9[%c0_13, %c0_14] : memref<16x128xf32, #tpu.memory_space<vmem>>, vector<16x128xf32>
      tpu.vector_store %arg9[%c0_13, %c0_14], %15 {strides = array<i32>} : memref<16x128xf32, #tpu.memory_space<vmem>>, vector<16x128xf32>,
    } else {
    }
    %c0 = arith.constant 0 : index
    %c0_1 = arith.constant 0 : index
    %3 = vector.load %arg3[%c0, %c0_1] : memref<16x128xbf16, #tpu.memory_space<vmem>>, vector<16x128xbf16>
    %c0_2 = arith.constant 0 : index
    %c0_3 = arith.constant 0 : index
    %4 = vector.load %arg9[%c0_2, %c0_3] : memref<16x128xf32, #tpu.memory_space<vmem>>, vector<16x128xf32>
    %c0_4 = arith.constant 0 : index
    %c0_5 = arith.constant 0 : index
    %5 = vector.load %arg4[%c0_4, %c0_5] : memref<128x128xbf16, #tpu.memory_space<vmem>>, vector<128x128xbf16>
    %cst = arith.constant dense<0.000000e+00> : vector<16x128xf32>
    %6 = tpu.matmul %3, %5, %cst {dimension_numbers = #tpu.dot_dimension_numbers<[1], [0], [0], [1], [0, 0, 1, 1], [], []>} : vector<16x128xbf16>, vector<128x128xbf16>, vector<16x128xf32> -> vector<16x128xf32>
    %7 = arith.addf %4, %6 : vector<16x128xf32>
    %c0_6 = arith.constant 0 : index
    %c0_7 = arith.constant 0 : index
    %8 = vector.load %arg9[%c0_6, %c0_7] : memref<16x128xf32, #tpu.memory_space<vmem>>, vector<16x128xf32>
    tpu.vector_store %arg9[%c0_6, %c0_7], %7 {strides = array<i32>} : memref<16x128xf32, #tpu.memory_space<vmem>>, vector<16x128xf32>,
    %c0_i32_8 = arith.constant 0 : i32
    %9 = arith.cmpi eq, %arg1, %c0_i32_8 : i32
    %10 = arith.extui %9 : i1 to i32
    %c0_i32_9 = arith.constant 0 : i32
    %11 = arith.cmpi ne, %10, %c0_i32_9 : i32
    scf.if %11 {
      %c0_i32_12 = arith.constant 0 : i32
      %15 = arith.cmpi eq, %arg2, %c0_i32_12 : i32
      %16 = arith.extui %15 : i1 to i32
      %c0_i32_13 = arith.constant 0 : i32
      %17 = arith.cmpi ne, %16, %c0_i32_13 : i32
      scf.if %17 {
        %cst_21 = arith.constant 0.000000e+00 : f32
        %23 = vector.broadcast %cst_21 : f32 to vector<16x4xf32>
        %c0_22 = arith.constant 0 : index
        %c0_23 = arith.constant 0 : index
        %24 = vector.load %arg10[%c0_22, %c0_23] : memref<16x4xf32, #tpu.memory_space<vmem>>, vector<16x4xf32>
        tpu.vector_store %arg10[%c0_22, %c0_23], %23 {strides = array<i32>} : memref<16x4xf32, #tpu.memory_space<vmem>>, vector<16x4xf32>,
      } else {
      }
      %c0_14 = arith.constant 0 : index
      %c0_15 = arith.constant 0 : index
      %18 = vector.load %arg10[%c0_14, %c0_15] : memref<16x4xf32, #tpu.memory_space<vmem>>, vector<16x4xf32>
      %c0_16 = arith.constant 0 : index
      %c0_17 = arith.constant 0 : index
      %19 = vector.load %arg6[%c0_16, %c0_17] : memref<128x4xbf16, #tpu.memory_space<vmem>>, vector<128x4xbf16>
      %cst_18 = arith.constant dense<0.000000e+00> : vector<16x4xf32>
      %20 = tpu.matmul %3, %19, %cst_18 {dimension_numbers = #tpu.dot_dimension_numbers<[1], [0], [0], [1], [0, 0, 1, 1], [], []>} : vector<16x128xbf16>, vector<128x4xbf16>, vector<16x4xf32> -> vector<16x4xf32>
      %21 = arith.addf %18, %20 : vector<16x4xf32>
      %c0_19 = arith.constant 0 : index
      %c0_20 = arith.constant 0 : index
      %22 = vector.load %arg10[%c0_19, %c0_20] : memref<16x4xf32, #tpu.memory_space<vmem>>, vector<16x4xf32>
      tpu.vector_store %arg10[%c0_19, %c0_20], %21 {strides = array<i32>} : memref<16x4xf32, #tpu.memory_space<vmem>>, vector<16x4xf32>,
    } else {
    }
    %c0_i32_10 = arith.constant 0 : i32
    %12 = arith.cmpi eq, %arg2, %c0_i32_10 : i32
    %13 = arith.extui %12 : i1 to i32
    %c0_i32_11 = arith.constant 0 : i32
    %14 = arith.cmpi ne, %13, %c0_i32_11 : i32
    scf.if %14 {
      %c0_12 = arith.constant 0 : index
      %c0_13 = arith.constant 0 : index
      %15 = vector.load %arg10[%c0_12, %c0_13] : memref<16x4xf32, #tpu.memory_space<vmem>>, vector<16x4xf32>
      %cst_14 = arith.constant 2.000000e+00 : f32
      %16 = vector.broadcast %cst_14 : f32 to vector<16x4xf32>
      %17 = arith.mulf %16, %15 : vector<16x4xf32>
      %18 = arith.truncf %17 : vector<16x4xf32> to vector<16x4xbf16>
      %c0_15 = arith.constant 0 : index
      %c0_16 = arith.constant 0 : index
      %19 = vector.load %arg7[%c0_15, %c0_16] : memref<4x128xbf16, #tpu.memory_space<vmem>>, vector<4x128xbf16>
      %cst_17 = arith.constant dense<0.000000e+00> : vector<16x128xf32>
      %20 = tpu.matmul %18, %19, %cst_17 {dimension_numbers = #tpu.dot_dimension_numbers<[1], [0], [0], [1], [0, 0, 1, 1], [], []>} : vector<16x4xbf16>, vector<4x128xbf16>, vector<16x128xf32> -> vector<16x128xf32>
      %c0_18 = arith.constant 0 : index
      %c0_19 = arith.constant 0 : index
      %21 = vector.load %arg9[%c0_18, %c0_19] : memref<16x128xf32, #tpu.memory_space<vmem>>, vector<16x128xf32>
      %22 = arith.addf %21, %20 : vector<16x128xf32>
      %c0_20 = arith.constant 0 : index
      %c0_21 = arith.constant 0 : index
      %23 = vector.load %arg5[%c0_20, %c0_21] : memref<1x128xf32, #tpu.memory_space<vmem>>, vector<1x128xf32>
      %24 = vector.broadcast %23 : vector<1x128xf32> to vector<16x128xf32>
      %25 = arith.addf %22, %24 : vector<16x128xf32>
      %c0_22 = arith.constant 0 : index
      %c0_23 = arith.constant 0 : index
      %26 = vector.load %arg8[%c0_22, %c0_23] : memref<16x128xf32, #tpu.memory_space<vmem>>, vector<16x128xf32>
      tpu.vector_store %arg8[%c0_22, %c0_23], %25 {strides = array<i32>} : memref<16x128xf32, #tpu.memory_space<vmem>>, vector<16x128xf32>,
    } else {
    }
    return
  }
  func.func @transform_0(%arg0: i32, %arg1: i32, %arg2: i32) -> (i32, i32) {
    %c0_i32 = arith.constant 0 : i32
    return %arg0, %arg2 : i32, i32
  }
  func.func @transform_1(%arg0: i32, %arg1: i32, %arg2: i32) -> (i32, i32) {
    %c0_i32 = arith.constant 0 : i32
    return %arg2, %arg1 : i32, i32
  }
  func.func @transform_2(%arg0: i32, %arg1: i32, %arg2: i32) -> (i32, i32) {
    %c0_i32 = arith.constant 0 : i32
    %c0_i32_0 = arith.constant 0 : i32
    return %c0_i32, %arg1 : i32, i32
  }
  func.func @transform_3(%arg0: i32, %arg1: i32, %arg2: i32) -> (i32, i32) {
    %c0_i32 = arith.constant 0 : i32
    %c0_i32_0 = arith.constant 0 : i32
    return %arg2, %c0_i32 : i32, i32
  }
  func.func @transform_4(%arg0: i32, %arg1: i32, %arg2: i32) -> (i32, i32) {
    %c0_i32 = arith.constant 0 : i32
    %c0_i32_0 = arith.constant 0 : i32
    return %c0_i32, %arg1 : i32, i32
  }
  func.func @transform_5(%arg0: i32, %arg1: i32, %arg2: i32) -> (i32, i32) {
    %c0_i32 = arith.constant 0 : i32
    return %arg0, %arg1 : i32, i32
  }
}

</mosaic_0001>

<bundles_post_ra>
// kernel: tpu_custom_call.1
= control target key start
LH: loop header
LB: loop body
LE: loop exit
PB: predicated region body
PF: predicated region fallthrough
CT: control target
= control target key end

     0   :  { %10 = vsyncpa [#allocation5], 0  ;;  %s633_s0 = inlined_call_operand.hbm [shape: bf16[16,128], index: 0, kind: input, shape index: {}]   ;;  %s634_s1 = inlined_call_operand.vmem [shape: bf16[128,128], index: 1, kind: input, shape index: {}]   ;;  %s635_s2 = inlined_call_operand.vmem [shape: f32[1,128], index: 2, kind: input, shape index: {}]   ;;  %s636_s3 = inlined_call_operand.vmem [shape: bf16[128,4], index: 3, kind: input, shape index: {}]   ;;  %s637_s4 = inlined_call_operand.vmem [shape: bf16[4,128], index: 4, kind: input, shape index: {}]   ;;  %s638_s5 = inlined_call_operand.hbm [shape: f32[16,128], index: 5, kind: output, shape index: {}]  }
   0x1   :  { %11 = vsyncpa [#allocation6], 0  ;;  %s527_s18 = smov [#allocation4]  }
   0x2   :  { %s17_s19 = sshll.u32 %s527_s18, 4  ;;  %s18_s19 = int_to_ptr.vmem [resolvable:$true] %s17_s19 }
   0x3   :  { %s491_s20 = scalar_lea.vmem %s18_s19, 128  ;;  %p496_p1 = scmp.lt.s32.totalorder %s18_s19, %s18_s19 }
   0x4   :  { %p492_p0 = scmp.ne.s32.totalorder %s18_s19, %s491_s20  ;;  %p497_p2 = scmp.lt.s32.totalorder %s491_s20, %s491_s20 }
   0x6   :  { %p498_p3 = por %p497_p2, %p496_p1 }
   0x8   :  { %p499_p4 = pnand %p498_p3, %p492_p0 }
   0xa   :  { %502 = shalt.err (!%p499_p4)
}
   0xb   :  { %s528_s21 = smov 64   ;;  %s529_s22 = smov 4  }
   0xc   :  { %23 = dma.hbm_to_vmem [thread:$0]  %s633_s0, 128, %s18_s19, [#allocation5], %s528_s21, %s528_s21, %s529_s22  }
   0xd   :  { %523 = dma.done.wait [#allocation5], 128  }
   0xe   :  { %524 = vsyncadd [#allocation5], 4294967168  ;;  %vm168_vm0 = vcmask 31744   ;;  %v530_v0 = vmov 0.0   ;;  %vm531_vm1 = vmmov 0   ;;  %v466_v1 = vld [vmem:[%s636_s3 + $0x38] sm:$0xff]  }
   0xf   :  { %432 = vmatprep.subr.bf16.mxu1 %v530_v0  ;;  %448 = vmatprep.mubr.msk.bf16.mxu1 %vm531_vm1, %v530_v0  ;;  %169 = vst.msk [vmem:[#allocation3] sm:$0xff] %vm168_vm0, %v530_v0  ;;  %170 = vst.msk [vmem:[#allocation3 + $0x8] sm:$0xff] %vm168_vm0, %v530_v0  ;;  %v467_v2 = vld [vmem:[%s636_s3 + $0x30] sm:$0xff]   ;;  %v468_v3 = vld [vmem:[%s636_s3 + $0x28] sm:$0xff]   ;;  %vm296_vm2 = vcmask 1041408   ;;  %s532_s6 = smov [#allocation7]  }
  0x10   :  { %412 = vmatprep.subr.bf16.mxu0 %v530_v0  ;;  %428 = vmatprep.mubr.msk.bf16.mxu0 %vm531_vm1, %v530_v0  ;;  %v475_v4 = vld [vmem:[%s634_s1 + $0x38] sm:$0xff]   ;;  %v469_v5 = vld [vmem:[%s636_s3 + $0x20] sm:$0xff]   ;;  %v476_v6 = vld [vmem:[%s634_s1 + $0x30] sm:$0xff]   ;;  %s361_s7 = sshll.u32 %s532_s6, 4  ;;  %s362_s7 = int_to_ptr.vmem [resolvable:$true] %s361_s7 }
  0x11   :  { %433 = vmatpush3.bf16.msra.mxu1 %v466_v1  ;;  %413 = vmatpush3.bf16.msra.mxu0 %v475_v4  ;;  %v470_v7 = vld [vmem:[%s636_s3 + $0x18] sm:$0xff]   ;;  %v477_v8 = vld [vmem:[%s634_s1 + $0x28] sm:$0xff]   ;;  %v471_v9 = vld [vmem:[%s636_s3 + $0x10] sm:$0xff]   ;;  %s503_s8 = scalar_lea.vmem %s362_s7, 256  ;;  %p508_p6 = scmp.lt.s32.totalorder %s362_s7, %s362_s7 }
  0x12   :  { %434 = vmatprep.subr.bf16.mxu1 %v530_v0  ;;  %414 = vmatprep.subr.bf16.mxu0 %v530_v0  ;;  %v478_v10 = vld [vmem:[%s634_s1 + $0x20] sm:$0xff]   ;;  %v472_v11 = vld [vmem:[%s636_s3 + $0x8] sm:$0xff]   ;;  %v479_v12 = vld [vmem:[%s634_s1 + $0x18] sm:$0xff]   ;;  %p504_p5 = scmp.ne.s32.totalorder %s362_s7, %s503_s8  ;;  %p509_p7 = scmp.lt.s32.totalorder %s503_s8, %s503_s8 }
  0x13   :  { %v473_v13 = vld [vmem:[%s636_s3] sm:$0xff]   ;;  %v480_v14 = vld [vmem:[%s634_s1 + $0x10] sm:$0xff]   ;;  %v481_v16 = vld [vmem:[%s634_s1 + $0x8] sm:$0xff]  }
  0x14   :  { %v474_v15 = vld [vmem:[#allocation4] sm:$0xff]   ;;  %v482_v17 = vld [vmem:[%s634_s1] sm:$0xff]   ;;  %p510_p8 = por %p509_p7, %p508_p6 }
  0x15   :  { %435 = vmatpush3.bf16.msra.mxu1 %v467_v2  ;;  %415 = vmatpush3.bf16.msra.mxu0 %v476_v6  ;;  %v291_v18 = vld [vmem:[%s637_s4] sm:$0x3] }
  0x16   :  { %436 = vmatprep.subr.bf16.mxu1 %v530_v0  ;;  %416 = vmatprep.subr.bf16.mxu0 %v530_v0  ;;  %v298_v19 = vsel %vm296_vm2, %v291_v18, 0  ;;  %v171_v20 = vld [vmem:[#allocation3] sm:$0xff]  ;;  %v172_v24 = vld [vmem:[#allocation3 + $0x8] sm:$0xff]  ;;  %p511_p9 = pnand %p510_p8, %p504_p5 }
  0x17   :  { %v391_v38 = vld [vmem:[%s635_s2] ss:$0 sm:$0xff] }
  0x19   :  { %437 = vmatpush3.bf16.msra.mxu1 %v468_v3  ;;  %417 = vmatpush3.bf16.msra.mxu0 %v477_v8 }
  0x1a   :  { %438 = vmatprep.subr.bf16.mxu1 %v530_v0  ;;  %418 = vmatprep.subr.bf16.mxu0 %v530_v0 }
  0x1d   :  { %439 = vmatpush3.bf16.msra.mxu1 %v469_v5  ;;  %419 = vmatpush3.bf16.msra.mxu0 %v478_v10 }
  0x1e   :  { %440 = vmatprep.subr.bf16.mxu1 %v530_v0  ;;  %420 = vmatprep.subr.bf16.mxu0 %v530_v0 }
  0x21   :  { %441 = vmatpush3.bf16.msra.mxu1 %v470_v7  ;;  %421 = vmatpush3.bf16.msra.mxu0 %v479_v12 }
  0x22   :  { %442 = vmatprep.subr.bf16.mxu1 %v530_v0  ;;  %422 = vmatprep.subr.bf16.mxu0 %v530_v0 }
  0x25   :  { %443 = vmatpush3.bf16.msra.mxu1 %v471_v9  ;;  %423 = vmatpush3.bf16.msra.mxu0 %v480_v14 }
  0x26   :  { %444 = vmatprep.subr.bf16.mxu1 %v530_v0  ;;  %424 = vmatprep.subr.bf16.mxu0 %v530_v0 }
  0x29   :  { %445 = vmatpush3.bf16.msra.mxu1 %v472_v11  ;;  %425 = vmatpush3.bf16.msra.mxu0 %v481_v16 }
  0x2a   :  { %446 = vmatprep.subr.bf16.mxu1 %v530_v0  ;;  %426 = vmatprep.subr.bf16.mxu0 %v530_v0 }
  0x2d   :  { %447 = vmatpush3.bf16.msra.mxu1 %v473_v13  ;;  %427 = vmatpush3.bf16.msra.mxu0 %v482_v17 }
  0x2e   :  { %452 = vmatprep.subr.bf16.mxu0 %v530_v0 }
  0x30   :  { %449 = vmatmul.mubr.bf16.vlgmr.msra.gmra.mxu1 %v474_v15  ;;  %429 = vmatmul.mubr.bf16.vlgmr.msra.gmra.mxu0 %v474_v15 }
  0x31   :  { %454 = vmatprep.mubr.msk.bf16.mxu0 %vm531_vm1, %v530_v0  ;;  %453 = vmatpush3.bf16.msra.mxu0 %v298_v19 }
  0xf0   :  { %v271_v21 = vpop.f32.mrf.mxu1  ;;  %v150_v33 = vpop.f32.mrf.mxu0 }
  0xf1   :  { %v278_v22 = vadd.f32 %v271_v21, %v171_v20 }
  0xf2   :  { %v450_v23 = vpop.f32.mrf.mxu1  ;;  %v430_v34 = vpop.f32.mrf.mxu0 }
  0xf3   :  { %281 = vst.msk [vmem:[#allocation3] sm:$0xff] %vm168_vm0, %v278_v22 }
  0xf4   :  { %v274_v25 = vpop.f32.mrf.mxu1  ;;  %v153_v35 = vpop.f32.mrf.mxu0 }
  0xf5   :  { %v279_v26 = vadd.f32 %v274_v25, %v172_v24 }
  0xf6   :  { %v451_v27 = vpop.f32.mrf.mxu1  ;;  %v431_v36 = vpop.f32.mrf.mxu0 }
  0xf7   :  { %282 = vst.msk [vmem:[#allocation3 + $0x8] sm:$0xff] %vm168_vm0, %v279_v26 }
  0xfa   :  { %v286_v28 = vld [vmem:[#allocation3] sm:$0xff] }
  0xfb   :  { %v288_v30 = vmul.f32 2.0, %v286_v28 }
  0xfe   :  { %v287_v29 = vld [vmem:[#allocation3 + $0x8] sm:$0xff] }
  0xff   :  { %v289_v31 = vmul.f32 2.0, %v287_v29 }
 0x101   :  { %v290_v32 = vpack.c.bf16 %v289_v31, %v288_v30 }
 0x103   :  { %455 = vmatmul.mubr.msk.bf16.vlgmr.msra.gmra.mxu0 %vm168_vm0, %v290_v32 }
 0x1c3   :  { %v334_v37 = vpop.f32.mrf.mxu0 }
 0x1c4   :  { %v343_v39 = vadd.f32 %v334_v37, %v150_v33 }
 0x1c5   :  { %v456_v40 = vpop.f32.mrf.mxu0 }
 0x1c6   :  { %v352_v41 = vadd.f32 %v391_v38, %v343_v39 }
 0x1c7   :  { %v337_v42 = vpop.f32.mrf.mxu0 }
 0x1c8   :  { %354 = vst [vmem:[#allocation7] sm:$0xff] %v352_v41  ;;  %v344_v43 = vadd.f32 %v337_v42, %v153_v35 }
 0x1c9   :  { %v457_v44 = vpop.f32.mrf.mxu0 }
 0x1ca   :  { %v353_v45 = vadd.f32 %v391_v38, %v344_v43 }
 0x1cc   :  { %355 = vst [vmem:[#allocation7 + $0x8] sm:$0xff] %v353_v45 }
 0x1cd   :  { %514 = shalt.err (!%p511_p9)
}
 0x1ce   :  { %s533_s2 = smov 128   ;;  %s534_s9 = smov 8  }
 0x1cf   :  { %367 = dma.vmem_to_hbm [thread:$0]  %s362_s7, 256, %s638_s5, [#allocation6], %s533_s2, %s533_s2, %s534_s9  }
 0x1d0   :  { %525 = dma.done.wait [#allocation6], 256  }
 0x1d1   :  { %526 = vsyncadd [#allocation6], 4294967040 }
 0x1d2   :  { %371 = vsyncpa [#allocation5], 1 }
 0x1d3   :  { %372 = vsyncpa [#allocation6], 1 }

</bundles_post_ra>
